<compile_context>
chip_gen: v6e
topology: v6e:2x2x1
jax: 0.10.0
libtpu: 0.0.40
codegen_flags: <defaults>
</compile_context>

<pallas_src>
import jax
import jax.numpy as jnp
from jax.experimental import pallas as pl
from jax.experimental.pallas import tpu as pltpu


def _autoencoder_kernel(x_ref, we_ref, be_ref, wd_ref, bd_ref, o_ref):
    # encoder: bf16 x @ bf16 We -> f32 accumulate on the MXU
    h = jnp.dot(x_ref[...], we_ref[...], preferred_element_type=jnp.float32)
    # bias-add + tanh in f32 (VPU + EUP); be is (1, hid) -> broadcasts over TB
    h = jnp.tanh(h + be_ref[...])
    # deliberate f32 -> bf16 downcast so the decoder matmul also runs at bf16
    # MXU rate; accumulate in f32.
    y = jnp.dot(h.astype(jnp.bfloat16), wd_ref[...],
                preferred_element_type=jnp.float32)
    y = y + bd_ref[...]          # bd is (1, out)
    o_ref[...] = y.astype(o_ref.dtype)


def autoencoder2_forward(x, w_enc, b_enc, w_dec, b_dec, *, tb=256):
    """x: [B, in_chs]; w_enc: [in_chs, hid]; b_enc: [hid];
    w_dec: [hid, out]; b_dec: [out]. Returns [B, out] in x.dtype (f32)."""
    B, in_chs = x.shape
    hid = w_enc.shape[1]
    out = w_dec.shape[1]

    # Batch tile: multiple of 8 (sublanes), capped to avoid vreg/VMEM spills.
    tb = max(8, min(tb, ((B + 7) // 8) * 8))
    n_tiles = pl.cdiv(B, tb)
    b_pad = n_tiles * tb

    # bf16 operands for the MXU; biases stay f32 for the f32 epilogue.
    x_bf16 = x.astype(jnp.bfloat16)
    if b_pad != B:
        x_bf16 = jnp.pad(x_bf16, ((0, b_pad - B), (0, 0)))
    we = w_enc.astype(jnp.bfloat16)
    wd = w_dec.astype(jnp.bfloat16)
    be2 = b_enc.reshape(1, hid).astype(jnp.float32)
    bd2 = b_dec.reshape(1, out).astype(jnp.float32)

    y_pad = pl.pallas_call(
        _autoencoder_kernel,
        out_shape=jax.ShapeDtypeStruct((b_pad, out), x.dtype),
        grid_spec=pltpu.PrefetchScalarGridSpec(
            num_scalar_prefetch=0,
            grid=(n_tiles,),
            in_specs=[
                # activations stream through the pipeline, one batch tile per step
                pl.BlockSpec((tb, in_chs), lambda i: (i, 0)),
                # weights / biases: same block every step -> resident in VMEM
                pl.BlockSpec((in_chs, hid), lambda i: (0, 0)),
                pl.BlockSpec((1, hid), lambda i: (0, 0)),
                pl.BlockSpec((hid, out), lambda i: (0, 0)),
                pl.BlockSpec((1, out), lambda i: (0, 0)),
            ],
            out_specs=pl.BlockSpec((tb, out), lambda i: (i, 0)),
        ),
        compiler_params=pltpu.CompilerParams(
            # batch tiles are independent -> shard across TCs on v7x
            dimension_semantics=("parallel",)),
    )(x_bf16, we, be2, wd, bd2)

    return y_pad[:B] if b_pad != B else y_pad


if __name__ == "__main__":
    # Shapes consistent with the module's two Linear layers; batch large
    # enough to exercise the batch-tiled pipeline (grid=(2,)) but still small.
    B, in_chs, hid_chs, out_chs = 256, 256, 128, 256
    TB = 128

    # Deterministic init mirroring the PyTorch __init__:
    # U = sqrt(6 / (1 + hid_chs + 256)); all params ~ Uniform(-U, U).
    U = (6.0 / (1 + hid_chs + 256)) ** 0.5
    key = jax.random.PRNGKey(0)
    k_x, k_we, k_be, k_wd, k_bd = jax.random.split(key, 5)

    x = jax.random.normal(k_x, (B, in_chs), dtype=jnp.float32)
    # PyTorch nn.Linear weight is [out_features, in_features]; we store the
    # transposed [in, out] layout for the kernel.
    w_enc = jax.random.uniform(k_we, (in_chs, hid_chs), jnp.float32, -U, U)
    b_enc = jax.random.uniform(k_be, (hid_chs,), jnp.float32, -U, U)
    w_dec = jax.random.uniform(k_wd, (hid_chs, out_chs), jnp.float32, -U, U)
    b_dec = jax.random.uniform(k_bd, (out_chs,), jnp.float32, -U, U)

    y = autoencoder2_forward(x, w_enc, b_enc, w_dec, b_dec, tb=TB)
    jax.block_until_ready(y)
    assert y.shape == (B, out_chs)

    # Reference 1: precision-matched (bf16 operands, f32 accumulation).
    h_ref = jnp.tanh(
        jnp.dot(x.astype(jnp.bfloat16), w_enc.astype(jnp.bfloat16),
                preferred_element_type=jnp.float32) + b_enc)
    y_ref_bf16 = jnp.dot(h_ref.astype(jnp.bfloat16),
                         w_dec.astype(jnp.bfloat16),
                         preferred_element_type=jnp.float32) + b_dec
    assert jnp.allclose(y, y_ref_bf16, atol=2e-3, rtol=2e-3)

    # Reference 2: full-f32 semantics of the original module (loose tolerance
    # because the kernel intentionally uses bf16 operands).
    y_ref_f32 = jnp.tanh(x @ w_enc + b_enc) @ w_dec + b_dec
    assert jnp.allclose(y, y_ref_f32, atol=5e-2, rtol=5e-2)

    print("KERNEL_OK")
</pallas_src>

<mosaic_0001>
module attributes {stable_mosaic.version = 11 : i64} {
  func.func @_autoencoder_kernel(%arg0: i32, %arg1: memref<128x256xbf16, #tpu.memory_space<vmem>>, %arg2: memref<256x128xbf16, #tpu.memory_space<vmem>>, %arg3: memref<1x128xf32, #tpu.memory_space<vmem>>, %arg4: memref<128x256xbf16, #tpu.memory_space<vmem>>, %arg5: memref<1x256xf32, #tpu.memory_space<vmem>>, %arg6: memref<128x256xf32, #tpu.memory_space<vmem>>) attributes {dimension_semantics = [#tpu.dimension_semantics<parallel>], iteration_bounds = array<i64: 2>, scalar_prefetch = 0 : i64, scratch_operands = 0 : i64, tpu.core_type = #tpu.core_type<tc>, window_params = [{transform_indices = @transform_0, window_bounds = array<i64: 128, 256>}, {pipeline_mode = #tpu.pipeline_mode<synchronous>, transform_indices = @transform_1, window_bounds = array<i64: 256, 128>}, {pipeline_mode = #tpu.pipeline_mode<synchronous>, transform_indices = @transform_2, window_bounds = array<i64: 1, 128>}, {pipeline_mode = #tpu.pipeline_mode<synchronous>, transform_indices = @transform_3, window_bounds = array<i64: 128, 256>}, {pipeline_mode = #tpu.pipeline_mode<synchronous>, transform_indices = @transform_4, window_bounds = array<i64: 1, 256>}, {transform_indices = @transform_5, window_bounds = array<i64: 128, 256>}]} {
    %c0 = arith.constant 0 : index
    %c0_0 = arith.constant 0 : index
    %0 = vector.load %arg1[%c0, %c0_0] : memref<128x256xbf16, #tpu.memory_space<vmem>>, vector<128x256xbf16>
    %c0_1 = arith.constant 0 : index
    %c0_2 = arith.constant 0 : index
    %1 = vector.load %arg2[%c0_1, %c0_2] : memref<256x128xbf16, #tpu.memory_space<vmem>>, vector<256x128xbf16>
    %cst = arith.constant dense<0.000000e+00> : vector<128x128xf32>
    %2 = tpu.matmul %0, %1, %cst {dimension_numbers = #tpu.dot_dimension_numbers<[1], [0], [0], [1], [0, 0, 1, 1], [], []>} : vector<128x256xbf16>, vector<256x128xbf16>, vector<128x128xf32> -> vector<128x128xf32>
    %c0_3 = arith.constant 0 : index
    %c0_4 = arith.constant 0 : index
    %3 = vector.load %arg3[%c0_3, %c0_4] : memref<1x128xf32, #tpu.memory_space<vmem>>, vector<1x128xf32>
    %4 = vector.broadcast %3 : vector<1x128xf32> to vector<128x128xf32>
    %5 = arith.addf %2, %4 : vector<128x128xf32>
    %6 = math.tanh %5 : vector<128x128xf32>
    %7 = arith.truncf %6 : vector<128x128xf32> to vector<128x128xbf16>
    %c0_5 = arith.constant 0 : index
    %c0_6 = arith.constant 0 : index
    %8 = vector.load %arg4[%c0_5, %c0_6] : memref<128x256xbf16, #tpu.memory_space<vmem>>, vector<128x256xbf16>
    %cst_7 = arith.constant dense<0.000000e+00> : vector<128x256xf32>
    %9 = tpu.matmul %7, %8, %cst_7 {dimension_numbers = #tpu.dot_dimension_numbers<[1], [0], [0], [1], [0, 0, 1, 1], [], []>} : vector<128x128xbf16>, vector<128x256xbf16>, vector<128x256xf32> -> vector<128x256xf32>
    %c0_8 = arith.constant 0 : index
    %c0_9 = arith.constant 0 : index
    %10 = vector.load %arg5[%c0_8, %c0_9] : memref<1x256xf32, #tpu.memory_space<vmem>>, vector<1x256xf32>
    %11 = vector.broadcast %10 : vector<1x256xf32> to vector<128x256xf32>
    %12 = arith.addf %9, %11 : vector<128x256xf32>
    %c0_10 = arith.constant 0 : index
    %c0_11 = arith.constant 0 : index
    %13 = vector.load %arg6[%c0_10, %c0_11] : memref<128x256xf32, #tpu.memory_space<vmem>>, vector<128x256xf32>
    tpu.vector_store %arg6[%c0_10, %c0_11], %12 {strides = array<i32>} : memref<128x256xf32, #tpu.memory_space<vmem>>, vector<128x256xf32>,
    return
  }
  func.func @transform_0(%arg0: i32) -> (i32, i32) {
    %c0_i32 = arith.constant 0 : i32
    %c0_i32_0 = arith.constant 0 : i32
    return %arg0, %c0_i32 : i32, i32
  }
  func.func @transform_1(%arg0: i32) -> (i32, i32) {
    %c0_i32 = arith.constant 0 : i32
    %c0_i32_0 = arith.constant 0 : i32
    %c0_i32_1 = arith.constant 0 : i32
    return %c0_i32, %c0_i32_0 : i32, i32
  }
  func.func @transform_2(%arg0: i32) -> (i32, i32) {
    %c0_i32 = arith.constant 0 : i32
    %c0_i32_0 = arith.constant 0 : i32
    %c0_i32_1 = arith.constant 0 : i32
    return %c0_i32, %c0_i32_0 : i32, i32
  }
  func.func @transform_3(%arg0: i32) -> (i32, i32) {
    %c0_i32 = arith.constant 0 : i32
    %c0_i32_0 = arith.constant 0 : i32
    %c0_i32_1 = arith.constant 0 : i32
    return %c0_i32, %c0_i32_0 : i32, i32
  }
  func.func @transform_4(%arg0: i32) -> (i32, i32) {
    %c0_i32 = arith.constant 0 : i32
    %c0_i32_0 = arith.constant 0 : i32
    %c0_i32_1 = arith.constant 0 : i32
    return %c0_i32, %c0_i32_0 : i32, i32
  }
  func.func @transform_5(%arg0: i32) -> (i32, i32) {
    %c0_i32 = arith.constant 0 : i32
    %c0_i32_0 = arith.constant 0 : i32
    return %arg0, %c0_i32 : i32, i32
  }
}

</mosaic_0001>

<bundles_post_ra>
// kernel: tpu_custom_call.1
= control target key start
LH: loop header
LB: loop body
LE: loop exit
PB: predicated region body
PF: predicated region fallthrough
CT: control target
= control target key end

     0   :  { %10 = vsyncpa [#allocation3], 0  ;;  %s1802_s0 = inlined_call_operand.hbm [shape: bf16[256,256], index: 0, kind: input, shape index: {}]   ;;  %s1803_s1 = inlined_call_operand.hbm [shape: bf16[256,128], index: 1, kind: input, shape index: {}]   ;;  %s1804_s2 = inlined_call_operand.vmem [shape: f32[1,128], index: 2, kind: input, shape index: {}]   ;;  %s1805_s3 = inlined_call_operand.hbm [shape: bf16[128,256], index: 3, kind: input, shape index: {}]   ;;  %s1806_s4 = inlined_call_operand.vmem [shape: f32[1,256], index: 4, kind: input, shape index: {}]   ;;  %s1807_s5 = inlined_call_operand.hbm [shape: f32[256,256], index: 5, kind: output, shape index: {}]  }
   0x1   :  { %12 = vsyncpa [#allocation3 + $0x1], 0 }
   0x2   :  { %13 = vsyncpa [#allocation6], 0 }
   0x3   :  { %14 = vsyncpa [#allocation4], 0 }
   0x4   :  { %16 = vsyncpa [#allocation4 + $0x1], 0  ;;  %s1486_s18 = smov 0   ;;  %s1488_s19 = smov 0  }
   0x5   :  { %s1490_s20 = smov 0   ;;  %s1492_s21 = smov 0  }
   0x6 LB: > { %s1507_s22 = sadd.s32 4294967295, %s1443_s21   ;;  %s988_s23 = sadd.s32 4294967294, %s1443_s21   ;;  %s1443_s21 = sphi %s1492_s21, %s1831_s21   ;;  %s1439_s20 = sphi %s1490_s20, %s1830_s20   ;;  %s1435_s19 = sphi %s1488_s19, %s1829_s19   ;;  %s1431_s18 = sphi %s1486_s18, %s1828_s18  }
   0x7   : > { %p42_p0 = scmp.ne.s32.totalorder %s1435_s19, %s1431_s18  ;;  %p1808_p1 = scmp.eq.s32.totalorder %s1507_s22, 0 }
   0x8   : > { %p156_p3 = scmp.eq.s32.totalorder %s988_s23, 1  ;;  %p989_p5 = scmp.ge.s32.totalorder %s1443_s21, 1 }
   0x9   : > { %p1516_p4 = por %p1808_p1, %p42_p0  ;;  %p163_p7 = scmp.lt.s32.totalorder %s1443_s21, 3 }
   0xa   : > { %p1521_p6 = por %p156_p3, %p42_p0  ;;  %s1445_s27 = smov [#allocation5]  }
   0xb   : > { %s1813_s24 = scalar_select %p1516_p4, 1, 0 }
   0xc   : > { %s1814_s25 = scalar_select %p1521_p6, 1, 0 }
   0xd   : > { %p1526_p8 = pnand %p989_p5, %p163_p7  ;;  %s175_s28 = sshll.u32 %s1445_s27, 4  ;;  %s176_s28 = int_to_ptr.vmem [resolvable:$true] %s175_s28 }
   0xe   : > { %s1446_s30 = smov [#allocation7]   ;;  %s1306_s7 = scalar_lea.vmem %s176_s28, 2048 }
   0xf   : > { %s1815_s26 = scalar_select %p1526_p8, 1, 0 }
  0x10   : > { %p1137_p9 = pneg %p1526_p8  ;;  %s191_s6 = sshll.u32 %s1446_s30, 4  ;;  %s192_s6 = int_to_ptr.vmem [resolvable:$true] %s191_s6 }
  0x11   : > { %p1307_p13 = scmp.ne.s32.totalorder %s176_s28, %s1306_s7  ;;  %p1314_p5 = scmp.lt.s32.totalorder %s176_s28, %s176_s28 }
  0x12   : > { %p1535_p11 = pnand %p1137_p9, %p1808_p1  ;;  %p1315_p7 = scmp.lt.s32.totalorder %s1306_s7, %s1306_s7 }
  0x14   : > { %p1297_p12 = pneg %p1535_p11  ;;  %p1316_p10 = por %p1315_p7, %p1314_p5 }
  0x16   : > { %p1309_p0 = pnand %p1307_p13, %p1297_p12 }
  0x18   : > { %p1310_p3 = pneg %p1309_p0 }
  0x1a   : > { %p1317_p9 = pnand %p1316_p10, %p1310_p3 }
  0x1c   : > { %1320 = shalt.err (!%p1317_p9)
}
  0x1d   : > { %s1447_s8 = smov 64   ;;  %s1448_s9 = smov 4  }
  0x1e   : > { %1140 = dma.hbm_to_vmem [thread:$0]  (!%p1535_p11), %s1803_s1, 2048, %s176_s28, [#allocation6], %s1447_s8, %s1447_s8, %s1448_s9  }
  0x1f   : > { %s1332_s12 = scalar_lea.vmem %s192_s6, 2048  ;;  %p1340_p2 = scmp.lt.s32.totalorder %s192_s6, %s192_s6 }
  0x20   : > { %p1333_p1 = scmp.ne.s32.totalorder %s192_s6, %s1332_s12  ;;  %p1341_p6 = scmp.lt.s32.totalorder %s1332_s12, %s1332_s12 }
  0x22   : > { %p1335_p13 = pnand %p1333_p1, %p1297_p12  ;;  %p1342_p5 = por %p1341_p6, %p1340_p2 }
  0x24   : > { %p1336_p0 = pneg %p1335_p13 }
  0x26   : > { %p1343_p10 = pnand %p1342_p5, %p1336_p0 }
  0x28   : > { %1346 = shalt.err (!%p1343_p10)
}
  0x29   : > { %s1809_s13 = smov 128   ;;  %s1450_s14 = smov 8  }
  0x2a   : > { %1143 = dma.hbm_to_vmem [thread:$0]  (!%p1535_p11), %s1805_s3, 2048, %s192_s6, [#allocation6], %s1809_s13, %s1809_s13, %s1450_s14  }
  0x2b   : > { %s1561_s17 = sadd.s32 1, %s1443_s21   ;;  %s29_s27 = sadd.s32 1, %s1439_s20 }
  0x2c   : > { %s26_s23 = ssub.s32 %s1443_s21, %s1561_s17  ;;  %p36_p2 = scmp.ne.s32.totalorder %s1439_s20, %s1435_s19 }
  0x2d   : > { %p27_p1 = scmp.eq.s32.totalorder %s26_s23, 0  ;;  %p37_p6 = scmp.eq.s32.totalorder %s1443_s21, 0 }
  0x2e   : > { %p1817_p3 = scmp.eq.s32.totalorder %s1507_s22, 1  ;;  %p1154_p9 = scmp.lt.s32.totalorder %s1443_s21, 2 }
  0x2f   : > { %s1570_s28 = scalar_select %p27_p1, %s1439_s20, %s29_s27  }
  0x30   : > { %p38_p12 = por %p37_p6, %p36_p2  ;;  %p1574_p7 = por %p1817_p3, %p36_p2 }
  0x31   : > { %s208_s30 = sand.u32 1, %s1439_s20   ;;  %s1058_s6 = sshll.u32 %s1443_s21, 11 }
  0x32   : > { %s1818_s29 = scalar_select %p1574_p7, 1, 0 }
  0x33   : > { %s993_s7 = sshll.u32 %s208_s30, 7  ;;  %s1584_s10 = scalar_lea.hbm %s1802_s0, %s1058_s6 }
  0x34   : > { %s212_s11 = scalar_lea.vmem [#allocation2], %s993_s7  ;;  %p1588_p11 = pnand %p1154_p9, %p38_p12 }
  0x35   : > { %s220_s12 = sshll.u32 %s212_s11, 4  ;;  %s1592_s16 = scalar_lea.sflag [#allocation3], %s208_s30  ;;  %s1586_s12 = int_to_ptr.vmem [resolvable:$true] %s220_s12 }
  0x36   : > { %s1347_s23 = scalar_lea.hbm %s1584_s10, 2048  ;;  %p1349_p0 = pneg %p1588_p11 }
  0x37   : > { %p1348_p13 = scmp.ne.s32.totalorder %s1584_s10, %s1347_s23  ;;  %s1352_s7 = scalar_lea.hbm %s1802_s0, 4096 }
  0x38   : > { %p1353_p1 = scmp.lt.s32.totalorder %s1584_s10, %s1802_s0  ;;  %p1354_p2 = scmp.lt.s32.totalorder %s1352_s7, %s1347_s23 }
  0x39   : > { %p1350_p5 = pnand %p1349_p0, %p1348_p13 }
  0x3a   : > { %p1355_p6 = por %p1354_p2, %p1353_p1 }
  0x3b   : > { %p1351_p10 = pneg %p1350_p5 }
  0x3d   : > { %p1356_p12 = pnand %p1355_p6, %p1351_p10 }
  0x3f   : > { %1359 = shalt.err (!%p1356_p12)
}
  0x40   : > { %s1360_s30 = scalar_lea.vmem %s1586_s12, 2048  ;;  %s1451_s11 = smov [#allocation2]  }
  0x41   : > { %p1361_p3 = scmp.ne.s32.totalorder %s1586_s12, %s1360_s30  ;;  %s1365_s13 = sshll.u32 %s1451_s11, 4  ;;  %s1366_s13 = int_to_ptr.vmem [resolvable:$false] %s1365_s13 }
  0x42   : > { %s1367_s27 = scalar_lea.vmem %s1366_s13, 4096  ;;  %p1368_p5 = scmp.lt.s32.totalorder %s1586_s12, %s1366_s13 }
  0x43   : > { %p1363_p9 = pnand %p1361_p3, %p1349_p0  ;;  %p1369_p7 = scmp.lt.s32.totalorder %s1367_s27, %s1360_s30 }
  0x45   : > { %p1364_p13 = pneg %p1363_p9  ;;  %p1370_p4 = por %p1369_p7, %p1368_p5 }
  0x47   : > { %p1371_p8 = pnand %p1370_p4, %p1364_p13 }
  0x49   : > { %1374 = shalt.err (!%p1371_p8)
}
  0x4a   : > { %s1820_s23 = smov 128   ;;  %p1821_p0 = scmp.ne.s32.totalorder %s1815_s26, 0 }
  0x4b   : > { %1147 = dma.hbm_to_vmem [thread:$0]  (!%p1588_p11), %s1584_s10, 2048, %s1586_s12, %s1592_s16, %s1820_s23, %s1820_s23, %s1450_s14  }
  0x4c   : > { %232 = sbr.rel (%p1821_p0) target bundleno = 608 (0x260), region = 40  ;;  %s1619_s6 = sand.u32 (!%p1821_p0), 1, %s1435_s19  }
  0x4d   : > { %s998_s13 = sshll.u32 (!%p1821_p0), %s1619_s6, 7  ;;  %s235_s7 = scalar_lea.sflag (!%p1821_p0), [#allocation3], %s1619_s6 }
  0x4e   : > { %s1623_s8 = scalar_lea.vmem (!%p1821_p0), [#allocation2], %s998_s13  ;;  %p1822_p4 = scmp.ne.s32.totalorder (!%p1821_p0), %s1813_s24, 0 }
  0x51   : > { %1418 = dma.done.wait (%p1822_p4), %s235_s7, 2048  }
  0x52   : > { %1420 = vsyncadd (%p1822_p4), %s235_s7, 4294965248  ;;  %p1823_p8 = scmp.eq.s32.totalorder %s1507_s22, 0 }
  0x54   : > { %1422 = dma.done.wait (%p1823_p8), [#allocation6], 4096   ;;  %p1824_p7 = pmov %p1823_p8 }
  0x55   : > { %v1199_v0 = vld [vmem:[#allocation5 + $0x78] sm:$0xff]   ;;  %v1201_v2 = vld [vmem:[#allocation5 + $0x70] sm:$0xff]   ;;  %v1203_v4 = vld [vmem:[#allocation5 + $0x68] sm:$0xff]   ;;  %v1452_v48 = vmov 0   ;;  %s1001_s12 = sshll.u32 %s1619_s6, 8  ;;  %s1060_s16 = sshll.u32 %s1507_s22, 12 }
  0x56   : > { %1424 = vsyncadd (%p1824_p7), [#allocation6], 4294963200  ;;  %v1200_v1 = vld [vmem:[#allocation5 + $0x38] sm:$0xff]   ;;  %1061 = vmatprep.subr.bf16.mxu0 %v1199_v0  ;;  %v1202_v3 = vld [vmem:[#allocation5 + $0x30] sm:$0xff]   ;;  %768 = vmatprep.mubr.bf16.mxu1 %v1452_v48  ;;  %s1687_s15 = scalar_lea.vmem [#allocation8], %s1001_s12  ;;  %s1754_s27 = scalar_lea.hbm %s1807_s5, %s1060_s16 }
  0x57   : > { %1062 = vmatpush3.bf16.msra.mxu0 %v1200_v1  ;;  %v1204_v5 = vld [vmem:[#allocation5 + $0x28] sm:$0xff]   ;;  %v1205_v6 = vld [vmem:[#allocation5 + $0x60] sm:$0xff]   ;;  %v1207_v8 = vld [vmem:[#allocation5 + $0x58] sm:$0xff]   ;;  %s896_s9 = sshll.u32 %s1687_s15, 4  ;;  %s882_s22 = scalar_lea.sflag [#allocation4], %s1619_s6  ;;  %s1756_s9 = int_to_ptr.vmem [resolvable:$true] %s896_s9 }
  0x58   : > { %1063 = vmatprep.subr.bf16.mxu0 %v1201_v2  ;;  %v1206_v7 = vld [vmem:[#allocation5 + $0x20] sm:$0xff]   ;;  %v1208_v9 = vld [vmem:[#allocation5 + $0x18] sm:$0xff]   ;;  %v1209_v10 = vld [vmem:[#allocation5 + $0x50] sm:$0xff]   ;;  %s1375_s23 = scalar_lea.vmem %s1756_s9, 4096  ;;  %p1825_p10 = scmp.ne.s32.totalorder %s1818_s29, 0 }
  0x59   : > { %v1217_v11 = vld [vmem:[%s1623_s8 + $0x4] ss:$8 sps:$4 sm:$0xff]   ;;  %v1210_v12 = vld [vmem:[#allocation5 + $0x10] sm:$0xff]   ;;  %v1215_v19 = vld [vmem:[%s1623_s8] ss:$8 sps:$4 sm:$0xff]   ;;  %p1376_p11 = scmp.ne.s32.totalorder %s1756_s9, %s1375_s23  ;;  %s1453_s13 = smov [#allocation8]  }
  0x5a   : > { %539 = vmatprep.mubr.bf16.mxu0 %v1217_v11  ;;  %v1211_v13 = vld [vmem:[#allocation5 + $0x48] sm:$0xff]   ;;  %v1213_v15 = vld [vmem:[#allocation5 + $0x40] sm:$0xff]   ;;  %v1239_v17 = vld [vmem:[#allocation7 + $0x74] ss:$8 sps:$4 sm:$0xff]   ;;  %s1379_s7 = sshll.u32 %s1453_s13, 4  ;;  %s1380_s7 = int_to_ptr.vmem [resolvable:$false] %s1379_s7 }
  0x5b   : > { %1064 = vmatpush3.bf16.msra.mxu0 %v1202_v3  ;;  %v1212_v14 = vld [vmem:[#allocation5 + $0x8] sm:$0xff]   ;;  %v1214_v16 = vld [vmem:[#allocation5] sm:$0xff]   ;;  %v1241_v18 = vld [vmem:[#allocation7 + $0x70] ss:$8 sps:$4 sm:$0xff]   ;;  %736 = vmatprep.subr.bf16.mxu1 %v1239_v17  ;;  %p1377_p1 = pnand %p1376_p11, %p1825_p10  ;;  %p1382_p6 = scmp.lt.s32.totalorder %s1756_s9, %s1380_s7 }
  0x5c   : > { %1065 = vmatprep.subr.bf16.mxu0 %v1203_v4  ;;  %v1242_v20 = vld [vmem:[#allocation7 + $0x64] ss:$8 sps:$4 sm:$0xff]   ;;  %v1218_v21 = vld [vmem:[%s1623_s8 + $0x14] ss:$8 sps:$4 sm:$0xff]   ;;  %737 = vmatpush1.bf16.msra.mxu1 %v1241_v18  ;;  %v1220_v22 = vld [vmem:[%s1623_s8 + $0x10] ss:$8 sps:$4 sm:$0xff]  }
  0x5d   : > { %738 = vmatprep.subr.bf16.mxu1 %v1242_v20  ;;  %v1221_v23 = vld [vmem:[%s1623_s8 + $0x24] ss:$8 sps:$4 sm:$0xff]   ;;  %v1223_v24 = vld [vmem:[%s1623_s8 + $0x20] ss:$8 sps:$4 sm:$0xff]   ;;  %v1224_v25 = vld [vmem:[%s1623_s8 + $0x34] ss:$8 sps:$4 sm:$0xff]   ;;  %p1378_p2 = pneg %p1377_p1 }
  0x5e   : > { %v1226_v26 = vld [vmem:[%s1623_s8 + $0x30] ss:$8 sps:$4 sm:$0xff]   ;;  %v1227_v27 = vld [vmem:[%s1623_s8 + $0x44] ss:$8 sps:$4 sm:$0xff]   ;;  %v1229_v28 = vld [vmem:[%s1623_s8 + $0x40] ss:$8 sps:$4 sm:$0xff]  }
  0x5f   : > { %1066 = vmatpush3.bf16.msra.mxu0 %v1204_v5  ;;  %v1230_v29 = vld [vmem:[%s1623_s8 + $0x54] ss:$8 sps:$4 sm:$0xff]   ;;  %v1232_v30 = vld [vmem:[%s1623_s8 + $0x50] ss:$8 sps:$4 sm:$0xff]   ;;  %v1233_v31 = vld [vmem:[%s1623_s8 + $0x64] ss:$8 sps:$4 sm:$0xff]  }
  0x60   : > { %1067 = vmatprep.subr.bf16.mxu0 %v1205_v6  ;;  %v1235_v32 = vld [vmem:[%s1623_s8 + $0x60] ss:$8 sps:$4 sm:$0xff]   ;;  %v1236_v33 = vld [vmem:[%s1623_s8 + $0x74] ss:$8 sps:$4 sm:$0xff]   ;;  %v1238_v34 = vld [vmem:[%s1623_s8 + $0x70] ss:$8 sps:$4 sm:$0xff]  }
  0x61   : > { %v1244_v35 = vld [vmem:[#allocation7 + $0x60] ss:$8 sps:$4 sm:$0xff]   ;;  %v1245_v36 = vld [vmem:[#allocation7 + $0x54] ss:$8 sps:$4 sm:$0xff]   ;;  %v1247_v37 = vld [vmem:[#allocation7 + $0x50] ss:$8 sps:$4 sm:$0xff]  }
  0x62   : > { %739 = vmatpush1.bf16.msra.mxu1 %v1244_v35  ;;  %v1248_v38 = vld [vmem:[#allocation7 + $0x44] ss:$8 sps:$4 sm:$0xff]   ;;  %v1250_v39 = vld [vmem:[#allocation7 + $0x40] ss:$8 sps:$4 sm:$0xff]   ;;  %v1251_v40 = vld [vmem:[#allocation7 + $0x34] ss:$8 sps:$4 sm:$0xff]  }
  0x63   : > { %1068 = vmatpush3.bf16.msra.mxu0 %v1206_v7  ;;  %740 = vmatprep.subr.bf16.mxu1 %v1245_v36  ;;  %v1253_v41 = vld [vmem:[#allocation7 + $0x30] ss:$8 sps:$4 sm:$0xff]   ;;  %v1254_v42 = vld [vmem:[#allocation7 + $0x24] ss:$8 sps:$4 sm:$0xff]   ;;  %v1256_v43 = vld [vmem:[#allocation7 + $0x20] ss:$8 sps:$4 sm:$0xff]  }
  0x64   : > { %1069 = vmatprep.subr.bf16.mxu0 %v1207_v8  ;;  %v1257_v44 = vld [vmem:[#allocation7 + $0x14] ss:$8 sps:$4 sm:$0xff]   ;;  %v1259_v45 = vld [vmem:[#allocation7 + $0x10] ss:$8 sps:$4 sm:$0xff]   ;;  %v1260_v46 = vld [vmem:[#allocation7 + $0x4] ss:$8 sps:$4 sm:$0xff]  }
  0x65   : > { %v1262_v47 = vld [vmem:[#allocation7] ss:$8 sps:$4 sm:$0xff]   ;;  %s1381_s8 = scalar_lea.vmem %s1380_s7, 8192 }
  0x66   : > { %741 = vmatpush1.bf16.msra.mxu1 %v1247_v37  ;;  %v1653_v51 = vld [vmem:[%s1804_s2] ss:$0 sm:$0xff]  ;;  %p1383_p12 = scmp.lt.s32.totalorder %s1381_s8, %s1375_s23 }
  0x67   : > { %1070 = vmatpush3.bf16.msra.mxu0 %v1208_v9  ;;  %742 = vmatprep.subr.bf16.mxu1 %v1248_v38 }
  0x68   : > { %1071 = vmatprep.subr.bf16.mxu0 %v1209_v10  ;;  %p1384_p3 = por %p1383_p12, %p1382_p6 }
  0x6a   : > { %743 = vmatpush1.bf16.msra.mxu1 %v1250_v39  ;;  %p1385_p9 = pnand %p1384_p3, %p1378_p2 }
  0x6b   : > { %1072 = vmatpush3.bf16.msra.mxu0 %v1210_v12  ;;  %744 = vmatprep.subr.bf16.mxu1 %v1251_v40 }
  0x6c   : > { %1073 = vmatprep.subr.bf16.mxu0 %v1211_v13 }
  0x6e   : > { %745 = vmatpush1.bf16.msra.mxu1 %v1253_v41 }
  0x6f   : > { %1074 = vmatpush3.bf16.msra.mxu0 %v1212_v14  ;;  %746 = vmatprep.subr.bf16.mxu1 %v1254_v42 }
  0x70   : > { %1075 = vmatprep.subr.bf16.mxu0 %v1213_v15 }
  0x72   : > { %747 = vmatpush1.bf16.msra.mxu1 %v1256_v43 }
  0x73   : > { %1076 = vmatpush3.bf16.msra.mxu0 %v1214_v16  ;;  %748 = vmatprep.subr.bf16.mxu1 %v1257_v44 }
  0x76   : > { %540 = vmatmul.mubr.bf16.vlgmr.msra.gmra.mxu0 %v1215_v19  ;;  %749 = vmatpush1.bf16.msra.mxu1 %v1259_v45 }
  0x77   : > { %547 = vmatprep.mubr.bf16.mxu0 %v1218_v21  ;;  %750 = vmatprep.subr.bf16.mxu1 %v1260_v46 }
  0x7a   : > { %751 = vmatpush1.bf16.msra.mxu1 %v1262_v47 }
  0x7e   : > { %548 = vmatmul.mubr.bf16.gmra.mxu0 %v1220_v22 }
  0x7f   : > { %555 = vmatprep.mubr.bf16.mxu0 %v1221_v23 }
  0x86   : > { %556 = vmatmul.mubr.bf16.gmra.mxu0 %v1223_v24 }
  0x87   : > { %563 = vmatprep.mubr.bf16.mxu0 %v1224_v25 }
  0x8e   : > { %564 = vmatmul.mubr.bf16.gmra.mxu0 %v1226_v26 }
  0x8f   : > { %571 = vmatprep.mubr.bf16.mxu0 %v1227_v27 }
  0x96   : > { %572 = vmatmul.mubr.bf16.gmra.mxu0 %v1229_v28 }
  0x97   : > { %579 = vmatprep.mubr.bf16.mxu0 %v1230_v29 }
  0x9e   : > { %580 = vmatmul.mubr.bf16.gmra.mxu0 %v1232_v30 }
  0x9f   : > { %587 = vmatprep.mubr.bf16.mxu0 %v1233_v31 }
  0xa6   : > { %588 = vmatmul.mubr.bf16.gmra.mxu0 %v1235_v32 }
  0xa7   : > { %595 = vmatprep.mubr.bf16.mxu0 %v1236_v33 }
  0xae   : > { %596 = vmatmul.mubr.bf16.gmra.mxu0 %v1238_v34 }
 0x136   : > { %v1077_v49 = vpop.f32.mrf.mxu0 }
 0x138   : > { %v1078_v50 = vpop.f32.mrf.mxu0 }
 0x139   : > { %v1079_v52 = vadd.f32 %v1078_v50, %v1077_v49 }
 0x13a   : > { %v1080_v53 = vpop.f32.mrf.mxu0 }
 0x13b   : > { %v542_v54 = vadd.f32 %v1079_v52, %v1653_v51 }
 0x13c   : > { %v1081_v55 = vpop.f32.mrf.mxu0 }
 0x13d   : > { %v1082_v56 = vadd.f32 %v1081_v55, %v1080_v53  ;;  %1263 = vtanh.f32 %v542_v54 }
 0x13e   : > { %v1083_v57 = vpop.f32.mrf.mxu0 }
 0x13f   : > { %v545_v58 = vadd.f32 %v1082_v56, %v1653_v51 }
 0x140   : > { %v1084_v59 = vpop.f32.mrf.mxu0 }
 0x141   : > { %1265 = vtanh.f32 %v545_v58  ;;  %v1085_v60 = vadd.f32 %v1084_v59, %v1083_v57 }
 0x142   : > { %v1086_v61 = vpop.f32.mrf.mxu0 }
 0x143   : > { %v550_v62 = vadd.f32 %v1085_v60, %v1653_v51 }
 0x144   : > { %v1087_v63 = vpop.f32.mrf.mxu0 }
 0x145   : > { %v1088_v0 = vadd.f32 %v1087_v63, %v1086_v61  ;;  %1267 = vtanh.f32 %v550_v62 }
 0x146   : > { %v1089_v1 = vpop.f32.mrf.mxu0 }
 0x147   : > { %v553_v2 = vadd.f32 %v1088_v0, %v1653_v51 }
 0x148   : > { %v1090_v3 = vpop.f32.mrf.mxu0 }
 0x149   : > { %1269 = vtanh.f32 %v553_v2  ;;  %v1091_v4 = vadd.f32 %v1090_v3, %v1089_v1 }
 0x14a   : > { %v1092_v5 = vpop.f32.mrf.mxu0  ;;  %v1264_v8 = vpop.eup %1263 }
 0x14b   : > { %v558_v6 = vadd.f32 %v1091_v4, %v1653_v51 }
 0x14c   : > { %v1093_v7 = vpop.f32.mrf.mxu0 }
 0x14d   : > { %v1094_v9 = vadd.f32 %v1093_v7, %v1092_v5  ;;  %1271 = vtanh.f32 %v558_v6 }
 0x14e   : > { %v1266_v10 = vpop.eup %1265  ;;  %v1095_v11 = vpop.f32.mrf.mxu0 }
 0x14f   : > { %v561_v12 = vadd.f32 %v1094_v9, %v1653_v51  ;;  %v620_v13 = vpack.c.bf16 %v1266_v10, %v1264_v8 }
 0x150   : > { %v1096_v14 = vpop.f32.mrf.mxu0 }
 0x151   : > { %1273 = vtanh.f32 %v561_v12  ;;  %v1097_v15 = vadd.f32 %v1096_v14, %v1095_v11  ;;  %769 = vmatmul.mubr.bf16.vlgmr.msra.gmra.mxu1 %v620_v13  ;;  %v646_v12 = vlaneseq  ;;  %v644_v14 = vld [vmem:[%s1806_s4] sm:$0x3] }
 0x152   : > { %v1098_v16 = vpop.f32.mrf.mxu0  ;;  %778 = vmatprep.mubr.bf16.mxu1 %v1452_v48  ;;  %v1268_v19 = vpop.eup %1267 }
 0x153   : > { %v566_v17 = vadd.f32 %v1097_v15, %v1653_v51  ;;  %v647_v13 = vshrl.u32 %v646_v12, 7 }
 0x154   : > { %v1099_v18 = vpop.f32.mrf.mxu0 }
 0x155   : > { %v1100_v20 = vadd.f32 %v1099_v18, %v1098_v16  ;;  %1275 = vtanh.f32 %v566_v17  ;;  %v652_v15 = vsub.s32 1, %v647_v13 }
 0x156   : > { %v1270_v21 = vpop.eup %1269  ;;  %v1101_v22 = vpop.f32.mrf.mxu0 }
 0x157   : > { %v569_v23 = vadd.f32 %v1100_v20, %v1653_v51  ;;  %v621_v24 = vpack.c.bf16 %v1270_v21, %v1268_v19  ;;  %v1684_v17 = vrot.slane %v644_v14, %v652_v15 }
 0x158   : > { %v1102_v25 = vpop.f32.mrf.mxu0 }
 0x159   : > { %1277 = vtanh.f32 %v569_v23  ;;  %v1103_v26 = vadd.f32 %v1102_v25, %v1101_v22  ;;  %779 = vmatmul.mubr.bf16.gmra.mxu1 %v621_v24 }
 0x15a   : > { %v1104_v27 = vpop.f32.mrf.mxu0  ;;  %788 = vmatprep.mubr.bf16.mxu1 %v1452_v48  ;;  %v1272_v30 = vpop.eup %1271 }
 0x15b   : > { %v574_v28 = vadd.f32 %v1103_v26, %v1653_v51 }
 0x15c   : > { %v1105_v29 = vpop.f32.mrf.mxu0 }
 0x15d   : > { %v1106_v31 = vadd.f32 %v1105_v29, %v1104_v27  ;;  %1279 = vtanh.f32 %v574_v28 }
 0x15e   : > { %v1274_v32 = vpop.eup %1273  ;;  %v1107_v33 = vpop.f32.mrf.mxu0 }
 0x15f   : > { %v577_v34 = vadd.f32 %v1106_v31, %v1653_v51  ;;  %v622_v35 = vpack.c.bf16 %v1274_v32, %v1272_v30 }
 0x160   : > { %v1108_v36 = vpop.f32.mrf.mxu0 }
 0x161   : > { %1281 = vtanh.f32 %v577_v34  ;;  %v1109_v37 = vadd.f32 %v1108_v36, %v1107_v33  ;;  %789 = vmatmul.mubr.bf16.gmra.mxu1 %v622_v35 }
 0x162   : > { %v1110_v38 = vpop.f32.mrf.mxu0  ;;  %798 = vmatprep.mubr.bf16.mxu1 %v1452_v48  ;;  %v1276_v41 = vpop.eup %1275 }
 0x163   : > { %v582_v39 = vadd.f32 %v1109_v37, %v1653_v51 }
 0x164   : > { %v1111_v40 = vpop.f32.mrf.mxu0 }
 0x165   : > { %v1112_v42 = vadd.f32 %v1111_v40, %v1110_v38  ;;  %1283 = vtanh.f32 %v582_v39 }
 0x166   : > { %v1278_v43 = vpop.eup %1277  ;;  %v1113_v44 = vpop.f32.mrf.mxu0 }
 0x167   : > { %v585_v45 = vadd.f32 %v1112_v42, %v1653_v51  ;;  %v623_v46 = vpack.c.bf16 %v1278_v43, %v1276_v41 }
 0x168   : > { %v1114_v47 = vpop.f32.mrf.mxu0 }
 0x169   : > { %1285 = vtanh.f32 %v585_v45  ;;  %v1115_v49 = vadd.f32 %v1114_v47, %v1113_v44  ;;  %799 = vmatmul.mubr.bf16.gmra.mxu1 %v623_v46 }
 0x16a   : > { %v1116_v50 = vpop.f32.mrf.mxu0  ;;  %808 = vmatprep.mubr.bf16.mxu1 %v1452_v48  ;;  %v1280_v54 = vpop.eup %1279 }
 0x16b   : > { %v590_v52 = vadd.f32 %v1115_v49, %v1653_v51 }
 0x16c   : > { %v1117_v53 = vpop.f32.mrf.mxu0 }
 0x16d   : > { %v1118_v55 = vadd.f32 %v1117_v53, %v1116_v50  ;;  %1287 = vtanh.f32 %v590_v52 }
 0x16e   : > { %v1282_v56 = vpop.eup %1281  ;;  %v1119_v57 = vpop.f32.mrf.mxu0 }
 0x16f   : > { %v593_v58 = vadd.f32 %v1118_v55, %v1653_v51  ;;  %v624_v59 = vpack.c.bf16 %v1282_v56, %v1280_v54 }
 0x170   : > { %v1120_v60 = vpop.f32.mrf.mxu0 }
 0x171   : > { %1289 = vtanh.f32 %v593_v58  ;;  %v1121_v61 = vadd.f32 %v1120_v60, %v1119_v57  ;;  %809 = vmatmul.mubr.bf16.gmra.mxu1 %v624_v59 }
 0x172   : > { %v1122_v62 = vpop.f32.mrf.mxu0  ;;  %818 = vmatprep.mubr.bf16.mxu1 %v1452_v48  ;;  %v1284_v1 = vpop.eup %1283 }
 0x173   : > { %v598_v63 = vadd.f32 %v1121_v61, %v1653_v51 }
 0x174   : > { %v1123_v0 = vpop.f32.mrf.mxu0 }
 0x175   : > { %v1124_v2 = vadd.f32 %v1123_v0, %v1122_v62  ;;  %1291 = vtanh.f32 %v598_v63 }
 0x176   : > { %v1286_v3 = vpop.eup %1285 }
 0x177   : > { %v601_v4 = vadd.f32 %v1124_v2, %v1653_v51  ;;  %v625_v5 = vpack.c.bf16 %v1286_v3, %v1284_v1  ;;  %v648_v51 = vsub.s32 0, %v647_v13 }
 0x179   : > { %1293 = vtanh.f32 %v601_v4  ;;  %819 = vmatmul.mubr.bf16.gmra.mxu1 %v625_v5  ;;  %v1682_v16 = vrot.slane %v644_v14, %v648_v51 }
 0x17a   : > { %828 = vmatprep.mubr.bf16.mxu1 %v1452_v48  ;;  %v1288_v6 = vpop.eup %1287 }
 0x17e   : > { %v1290_v7 = vpop.eup %1289 }
 0x17f   : > { %v626_v8 = vpack.c.bf16 %v1290_v7, %v1288_v6 }
 0x181   : > { %829 = vmatmul.mubr.bf16.gmra.mxu1 %v626_v8 }
 0x182   : > { %838 = vmatprep.mubr.bf16.mxu1 %v1452_v48  ;;  %v1292_v9 = vpop.eup %1291 }
 0x186   : > { %v1294_v10 = vpop.eup %1293 }
 0x187   : > { %v627_v11 = vpack.c.bf16 %v1294_v10, %v1292_v9 }
 0x189   : > { %839 = vmatmul.mubr.bf16.gmra.mxu1 %v627_v11 }
 0x211   : > { %v770_v18 = vpop.f32.mrf.mxu1 }
 0x212   : > { %v771_v48 = vadd.f32 %v770_v18, %v1682_v16 }
 0x213   : > { %v772_v19 = vpop.f32.mrf.mxu1 }
 0x214   : > { %849 = vst [vmem:[%s1687_s15] sm:$0xff] %v771_v48  ;;  %v773_v20 = vadd.f32 %v772_v19, %v1684_v17 }
 0x215   : > { %v774_v21 = vpop.f32.mrf.mxu1 }
 0x216   : > { %850 = vst [vmem:[%s1687_s15 + $0x8] sm:$0xff] %v773_v20  ;;  %v775_v22 = vadd.f32 %v774_v21, %v1682_v16 }
 0x217   : > { %v776_v23 = vpop.f32.mrf.mxu1 }
 0x218   : > { %851 = vst [vmem:[%s1687_s15 + $0x10] sm:$0xff] %v775_v22  ;;  %v777_v24 = vadd.f32 %v776_v23, %v1684_v17 }
 0x219   : > { %v780_v25 = vpop.f32.mrf.mxu1 }
 0x21a   : > { %852 = vst [vmem:[%s1687_s15 + $0x18] sm:$0xff] %v777_v24  ;;  %v781_v26 = vadd.f32 %v780_v25, %v1682_v16 }
 0x21b   : > { %v782_v27 = vpop.f32.mrf.mxu1 }
 0x21c   : > { %853 = vst [vmem:[%s1687_s15 + $0x20] sm:$0xff] %v781_v26  ;;  %v783_v28 = vadd.f32 %v782_v27, %v1684_v17 }
 0x21d   : > { %v784_v29 = vpop.f32.mrf.mxu1 }
 0x21e   : > { %854 = vst [vmem:[%s1687_s15 + $0x28] sm:$0xff] %v783_v28  ;;  %v785_v30 = vadd.f32 %v784_v29, %v1682_v16 }
 0x21f   : > { %v786_v31 = vpop.f32.mrf.mxu1 }
 0x220   : > { %855 = vst [vmem:[%s1687_s15 + $0x30] sm:$0xff] %v785_v30  ;;  %v787_v32 = vadd.f32 %v786_v31, %v1684_v17 }
 0x221   : > { %v790_v33 = vpop.f32.mrf.mxu1 }
 0x222   : > { %856 = vst [vmem:[%s1687_s15 + $0x38] sm:$0xff] %v787_v32  ;;  %v791_v34 = vadd.f32 %v790_v33, %v1682_v16 }
 0x223   : > { %v792_v35 = vpop.f32.mrf.mxu1 }
 0x224   : > { %857 = vst [vmem:[%s1687_s15 + $0x40] sm:$0xff] %v791_v34  ;;  %v793_v36 = vadd.f32 %v792_v35, %v1684_v17 }
 0x225   : > { %v794_v37 = vpop.f32.mrf.mxu1 }
 0x226   : > { %858 = vst [vmem:[%s1687_s15 + $0x48] sm:$0xff] %v793_v36  ;;  %v795_v38 = vadd.f32 %v794_v37, %v1682_v16 }
 0x227   : > { %v796_v39 = vpop.f32.mrf.mxu1 }
 0x228   : > { %859 = vst [vmem:[%s1687_s15 + $0x50] sm:$0xff] %v795_v38  ;;  %v797_v40 = vadd.f32 %v796_v39, %v1684_v17 }
 0x229   : > { %v800_v41 = vpop.f32.mrf.mxu1 }
 0x22a   : > { %860 = vst [vmem:[%s1687_s15 + $0x58] sm:$0xff] %v797_v40  ;;  %v801_v42 = vadd.f32 %v800_v41, %v1682_v16 }
 0x22b   : > { %v802_v43 = vpop.f32.mrf.mxu1 }
 0x22c   : > { %861 = vst [vmem:[%s1687_s15 + $0x60] sm:$0xff] %v801_v42  ;;  %v803_v44 = vadd.f32 %v802_v43, %v1684_v17 }
 0x22d   : > { %v804_v45 = vpop.f32.mrf.mxu1 }
 0x22e   : > { %862 = vst [vmem:[%s1687_s15 + $0x68] sm:$0xff] %v803_v44  ;;  %v805_v46 = vadd.f32 %v804_v45, %v1682_v16 }
 0x22f   : > { %v806_v47 = vpop.f32.mrf.mxu1 }
 0x230   : > { %863 = vst [vmem:[%s1687_s15 + $0x70] sm:$0xff] %v805_v46  ;;  %v807_v49 = vadd.f32 %v806_v47, %v1684_v17 }
 0x231   : > { %v810_v50 = vpop.f32.mrf.mxu1 }
 0x232   : > { %864 = vst [vmem:[%s1687_s15 + $0x78] sm:$0xff] %v807_v49  ;;  %v811_v52 = vadd.f32 %v810_v50, %v1682_v16 }
 0x233   : > { %v812_v53 = vpop.f32.mrf.mxu1 }
 0x234   : > { %865 = vst [vmem:[%s1687_s15 + $0x80] sm:$0xff] %v811_v52  ;;  %v813_v54 = vadd.f32 %v812_v53, %v1684_v17 }
 0x235   : > { %v814_v55 = vpop.f32.mrf.mxu1 }
 0x236   : > { %866 = vst [vmem:[%s1687_s15 + $0x88] sm:$0xff] %v813_v54  ;;  %v815_v56 = vadd.f32 %v814_v55, %v1682_v16 }
 0x237   : > { %v816_v57 = vpop.f32.mrf.mxu1 }
 0x238   : > { %867 = vst [vmem:[%s1687_s15 + $0x90] sm:$0xff] %v815_v56  ;;  %v817_v58 = vadd.f32 %v816_v57, %v1684_v17 }
 0x239   : > { %v820_v59 = vpop.f32.mrf.mxu1 }
 0x23a   : > { %868 = vst [vmem:[%s1687_s15 + $0x98] sm:$0xff] %v817_v58  ;;  %v821_v60 = vadd.f32 %v820_v59, %v1682_v16 }
 0x23b   : > { %v822_v61 = vpop.f32.mrf.mxu1 }
 0x23c   : > { %869 = vst [vmem:[%s1687_s15 + $0xa0] sm:$0xff] %v821_v60  ;;  %v823_v62 = vadd.f32 %v822_v61, %v1684_v17 }
 0x23d   : > { %v824_v63 = vpop.f32.mrf.mxu1 }
 0x23e   : > { %870 = vst [vmem:[%s1687_s15 + $0xa8] sm:$0xff] %v823_v62  ;;  %v825_v0 = vadd.f32 %v824_v63, %v1682_v16 }
 0x23f   : > { %v826_v1 = vpop.f32.mrf.mxu1 }
 0x240   : > { %871 = vst [vmem:[%s1687_s15 + $0xb0] sm:$0xff] %v825_v0  ;;  %v827_v2 = vadd.f32 %v826_v1, %v1684_v17 }
 0x241   : > { %v830_v3 = vpop.f32.mrf.mxu1 }
 0x242   : > { %872 = vst [vmem:[%s1687_s15 + $0xb8] sm:$0xff] %v827_v2  ;;  %v831_v4 = vadd.f32 %v830_v3, %v1682_v16 }
 0x243   : > { %v832_v5 = vpop.f32.mrf.mxu1 }
 0x244   : > { %873 = vst [vmem:[%s1687_s15 + $0xc0] sm:$0xff] %v831_v4  ;;  %v833_v6 = vadd.f32 %v832_v5, %v1684_v17 }
 0x245   : > { %v834_v7 = vpop.f32.mrf.mxu1 }
 0x246   : > { %874 = vst [vmem:[%s1687_s15 + $0xc8] sm:$0xff] %v833_v6  ;;  %v835_v8 = vadd.f32 %v834_v7, %v1682_v16 }
 0x247   : > { %v836_v9 = vpop.f32.mrf.mxu1 }
 0x248   : > { %875 = vst [vmem:[%s1687_s15 + $0xd0] sm:$0xff] %v835_v8  ;;  %v837_v10 = vadd.f32 %v836_v9, %v1684_v17 }
 0x249   : > { %v840_v11 = vpop.f32.mrf.mxu1 }
 0x24a   : > { %876 = vst [vmem:[%s1687_s15 + $0xd8] sm:$0xff] %v837_v10  ;;  %v841_v12 = vadd.f32 %v840_v11, %v1682_v16 }
 0x24b   : > { %v842_v13 = vpop.f32.mrf.mxu1 }
 0x24c   : > { %877 = vst [vmem:[%s1687_s15 + $0xe0] sm:$0xff] %v841_v12  ;;  %v843_v51 = vadd.f32 %v842_v13, %v1684_v17 }
 0x24d   : > { %v844_v14 = vpop.f32.mrf.mxu1 }
 0x24e   : > { %878 = vst [vmem:[%s1687_s15 + $0xe8] sm:$0xff] %v843_v51  ;;  %v845_v15 = vadd.f32 %v844_v14, %v1682_v16 }
 0x24f   : > { %v846_v18 = vpop.f32.mrf.mxu1 }
 0x250   : > { %879 = vst [vmem:[%s1687_s15 + $0xf0] sm:$0xff] %v845_v15  ;;  %v847_v48 = vadd.f32 %v846_v18, %v1684_v17 }
 0x252   : > { %880 = vst [vmem:[%s1687_s15 + $0xf8] sm:$0xff] %v847_v48 }
 0x253   : > { %1388 = shalt.err (!%p1385_p9)
}
 0x254   : > { %s1389_s24 = scalar_lea.hbm %s1754_s27, 4096  ;;  %s1393_s10 = scalar_lea.hbm %s1807_s5, 8192 }
 0x255   : > { %p1390_p13 = scmp.ne.s32.totalorder %s1754_s27, %s1389_s24  ;;  %p1394_p4 = scmp.lt.s32.totalorder %s1754_s27, %s1807_s5 }
 0x256   : > { %p1395_p8 = scmp.lt.s32.totalorder %s1393_s10, %s1389_s24 }
 0x257   : > { %p1391_p5 = pnand %p1390_p13, %p1825_p10 }
 0x258   : > { %p1396_p7 = por %p1395_p8, %p1394_p4 }
 0x259   : > { %p1392_p0 = pneg %p1391_p5 }
 0x25b   : > { %p1397_p11 = pnand %p1396_p7, %p1392_p0 }
 0x25d   : > { %1400 = shalt.err (!%p1397_p11)
}
 0x25e   : > { %s1454_s16 = smov 256   ;;  %s1455_s30 = smov 16  }
 0x25f   : > { %1135 = dma.vmem_to_hbm [thread:$0]  (%p1825_p10), %s1756_s9, 4096, %s1754_s27, %s882_s22, %s1454_s16, %s1454_s16, %s1455_s30  }
 0x260 PF: > { %s911_s11 = sand.u32 1, %s1431_s18   ;;  %p1826_p1 = scmp.ne.s32.totalorder %s1814_s25, 0 }
 0x261   : > { %p1827_p2 = scmp.ge.s32.totalorder %s1443_s21, 2  ;;  %s912_s23 = scalar_lea.sflag [#allocation4], %s911_s11 }
 0x263   : > { %p1149_p6 = pnand %p1827_p2, %p1826_p1 }
 0x265   : > { %p1150_p12 = pneg %p1149_p6 }
 0x267   : > { %1426 = dma.done.wait (%p1150_p12), %s912_s23, 4096  }
 0x268   : > { %1428 = vsyncadd (%p1150_p12), %s912_s23, 4294963200  ;;  %p19_p3 = scmp.ge.s32.totalorder %s1561_s17, 4   ;;  %s1828_s18 = smov %s1435_s19 }
 0x269   : > { %s1829_s19 = smov %s1439_s20  ;;  %s1830_s20 = smov %s1570_s28 }
 0x26a   : > { %s1831_s21 = smov %s1561_s17  ;;  %21 = sbr.rel (!%p19_p3) target bundleno = 6 (0x6), region = 93 }
 0x26f   :  { %917 = vsyncpa [#allocation3], 1 }
 0x270   :  { %919 = vsyncpa [#allocation3 + $0x1], 1 }
 0x271   :  { %920 = vsyncpa [#allocation6], 1 }
 0x272   :  { %921 = vsyncpa [#allocation4], 1 }
 0x273   :  { %923 = vsyncpa [#allocation4 + $0x1], 1 }

</bundles_post_ra>
